<compile_context>
chip_gen: v6e
topology: v6e:2x2x1
jax: 0.10.0
libtpu: 0.0.40
codegen_flags: <defaults>
</compile_context>

<pallas_src>
import functools

import jax
import jax.numpy as jnp
from jax.experimental import pallas as pl
from jax.experimental.pallas import tpu as pltpu

EPS = 1e-6


def identity_loss_kernel(e1_ref, e2_ref, out_ref, acc_ref, *,
                         total_rows, blocks_per_core):
    c = pl.program_id(0)          # core-split axis ("parallel")
    i = pl.program_id(1)          # batch-reduction axis ("arbitrary")

    @pl.when(i == 0)
    def _():
        acc_ref[...] = jnp.zeros_like(acc_ref)

    e1 = e1_ref[...].astype(jnp.float32)
    e2 = e2_ref[...].astype(jnp.float32)

    # Per-row reductions over the feature (lane) axis.
    dot = jnp.sum(e1 * e2, axis=1, keepdims=True)   # (TB, 1)
    s1 = jnp.sum(e1 * e1, axis=1, keepdims=True)    # (TB, 1)
    s2 = jnp.sum(e2 * e2, axis=1, keepdims=True)    # (TB, 1)

    # cos = dot / max(||e1||*||e2||, eps)  ==  dot * rsqrt(max(s1*s2, eps^2))
    cos = dot * jax.lax.rsqrt(jnp.maximum(s1 * s2, EPS * EPS))

    # Mask rows beyond B: covers the partial last tile and the clamped/duplicated
    # tile a core gets when the block count does not split evenly across cores.
    tb = e1.shape[0]
    logical_block = c * blocks_per_core + i
    row_ids = logical_block * tb + jax.lax.broadcasted_iota(jnp.int32, (tb, 1), 0)
    acc_ref[...] += jnp.where(row_ids < total_rows, 1.0 - cos, 0.0)

    # One cross-sublane reduce + output write per core, at the final step only.
    @pl.when(i == pl.num_programs(1) - 1)
    def _():
        out_ref[...] = jnp.sum(acc_ref[...], keepdims=True)   # (1, 1)


def _vmem_capacity_bytes():
    try:
        return int(pltpu.get_tpu_info().vmem_capacity_bytes)
    except Exception:
        return 64 * 1024 * 1024   # conservative (v7x-sized) fallback


def _tile_plan(feat, itemsize):
    """Rows per tile, pipeline depth, and scoped-VMEM limit per chip generation."""
    vmem = _vmem_capacity_bytes()
    if vmem >= 96 * 1024 * 1024:            # v5e / v6e: 128 MiB physical VMEM
        input_budget, row_cap, n_buffers = 48 * 1024 * 1024, 4096, 3
        vmem_limit = 64 * 1024 * 1024
    else:                                   # v7x: 64 MiB per TensorCore
        input_budget, row_cap, n_buffers = 36 * 1024 * 1024, 2048, 2
        vmem_limit = 48 * 1024 * 1024
    per_row = 2 * n_buffers * feat * itemsize    # 2 inputs x n_buffers buffers
    tb = input_budget // max(per_row, 1)
    tb = max(8, min(row_cap, (tb // 8) * 8))
    return tb, n_buffers, vmem_limit


def _make_in_spec(tb, feat, index_map, n_buffers):
    if n_buffers > 2 and hasattr(pl, "Buffered"):
        try:
            return pl.BlockSpec((tb, feat), index_map,
                                pipeline_mode=pl.Buffered(n_buffers))
        except TypeError:
            pass
    return pl.BlockSpec((tb, feat), index_map)


def identity_loss(real_embeddings, fake_embeddings, *, block_rows=None,
                  cast_inputs_to_bf16=False):
    """real_embeddings, fake_embeddings: (B, D) arrays. Returns scalar f32 loss."""
    assert real_embeddings.shape == fake_embeddings.shape
    B, D = real_embeddings.shape

    if cast_inputs_to_bf16 and real_embeddings.dtype == jnp.float32:
        # Optional: halves HBM traffic for this bandwidth-bound kernel; accumulation
        # inside the kernel stays f32 (only input rounding changes).
        real_embeddings = real_embeddings.astype(jnp.bfloat16)
        fake_embeddings = fake_embeddings.astype(jnp.bfloat16)

    itemsize = jnp.dtype(real_embeddings.dtype).itemsize
    auto_tb, n_buffers, vmem_limit = _tile_plan(D, itemsize)
    tb = auto_tb if block_rows is None else block_rows

    if B <= tb:
        tb = B                               # single full-array tile (always legal)
    else:
        tb = max(8, (tb // 8) * 8)           # keep sublane dim a multiple of 8
    num_blocks = pl.cdiv(B, tb)

    # Split the batch stream across both TensorCores on v7x; harmless on 1-TC chips.
    num_cores = 2 if num_blocks >= 2 else 1
    blocks_per_core = pl.cdiv(num_blocks, num_cores)

    def in_index_map(c, i):
        b = c * blocks_per_core + i
        return (jnp.minimum(b, num_blocks - 1), 0)   # clamp; extra tiles are masked

    in_spec = _make_in_spec(tb, D, in_index_map, n_buffers)

    partials = pl.pallas_call(
        functools.partial(identity_loss_kernel, total_rows=B,
                          blocks_per_core=blocks_per_core),
        out_shape=jax.ShapeDtypeStruct((num_cores, 1, 1), jnp.float32),
        grid=(num_cores, blocks_per_core),
        in_specs=[in_spec, in_spec],
        out_specs=pl.BlockSpec((None, 1, 1), lambda c, i: (c, 0, 0)),
        scratch_shapes=[pltpu.VMEM((tb, 1), jnp.float32)],
        compiler_params=pltpu.CompilerParams(
            dimension_semantics=("parallel", "arbitrary"),
            vmem_limit_bytes=vmem_limit,
        ),
    )(real_embeddings, fake_embeddings)

    return jnp.sum(partials) / jnp.float32(B)


if __name__ == "__main__":
    key = jax.random.PRNGKey(0)
    k1, k2, k3, k4, k5, k6 = jax.random.split(key, 6)

    def reference(e1, e2):
        e1 = e1.astype(jnp.float32)
        e2 = e2.astype(jnp.float32)
        dot = jnp.sum(e1 * e2, axis=1)
        denom = jnp.maximum(
            jnp.linalg.norm(e1, axis=1) * jnp.linalg.norm(e2, axis=1), EPS
        )
        return jnp.mean(1.0 - dot / denom)

    # Test 1: tiny shapes typical of embedding inputs (single tile, 1 core-slot).
    B, D = 2, 32
    real = jax.random.normal(k1, (B, D), dtype=jnp.float32)
    fake = jax.random.normal(k2, (B, D), dtype=jnp.float32)
    loss = identity_loss(real, fake)
    jax.block_until_ready(loss)
    ref = reference(real, fake)
    assert jnp.allclose(loss, ref, atol=1e-4, rtol=1e-4), (loss, ref)

    # Test 2: bf16 inputs, odd block count (3) -> 2-way core split with a clamped
    # duplicate tile on core 1 plus a masked partial last tile.
    B2, D2 = 300, 256
    real2 = jax.random.normal(k3, (B2, D2), dtype=jnp.bfloat16)
    fake2 = jax.random.normal(k4, (B2, D2), dtype=jnp.bfloat16)
    loss2 = identity_loss(real2, fake2, block_rows=128)
    jax.block_until_ready(loss2)
    ref2 = reference(real2, fake2)
    assert jnp.allclose(loss2, ref2, atol=1e-4, rtol=1e-4), (loss2, ref2)

    # Test 3: f32, evenly divisible blocks across both core-slots.
    B3, D3 = 256, 128
    real3 = jax.random.normal(k5, (B3, D3), dtype=jnp.float32)
    fake3 = jax.random.normal(k6, (B3, D3), dtype=jnp.float32)
    loss3 = identity_loss(real3, fake3, block_rows=64)
    jax.block_until_ready(loss3)
    ref3 = reference(real3, fake3)
    assert jnp.allclose(loss3, ref3, atol=1e-4, rtol=1e-4), (loss3, ref3)

    print("KERNEL_OK")
</pallas_src>

<mosaic_0001>
module attributes {stable_mosaic.version = 11 : i64} {
  func.func @identity_loss_kernel(%arg0: i32, %arg1: i32, %arg2: memref<2x32xf32, #tpu.memory_space<vmem>>, %arg3: memref<2x32xf32, #tpu.memory_space<vmem>>, %arg4: memref<1x1x1xf32, #tpu.memory_space<vmem>>, %arg5: memref<2x1xf32, #tpu.memory_space<vmem>>) attributes {dimension_semantics = [#tpu.dimension_semantics<parallel>, #tpu.dimension_semantics<arbitrary>], iteration_bounds = array<i64: 1, 1>, scalar_prefetch = 0 : i64, scratch_operands = 1 : i64, tpu.core_type = #tpu.core_type<tc>, window_params = [{transform_indices = @transform_0, window_bounds = array<i64: 2, 32>}, {transform_indices = @transform_1, window_bounds = array<i64: 2, 32>}, {transform_indices = @transform_2, window_bounds = array<i64: 1, 1, 1>}]} {
    %c0_i32 = arith.constant 0 : i32
    %0 = arith.cmpi eq, %arg1, %c0_i32 : i32
    %1 = arith.extui %0 : i1 to i32
    %c0_i32_0 = arith.constant 0 : i32
    %2 = arith.cmpi ne, %1, %c0_i32_0 : i32
    scf.if %2 {
      %cst_16 = arith.constant 0.000000e+00 : f32
      %37 = vector.broadcast %cst_16 : f32 to vector<2x1xf32>
      %c0_17 = arith.constant 0 : index
      %c0_18 = arith.constant 0 : index
      %38 = vector.load %arg5[%c0_17, %c0_18] : memref<2x1xf32, #tpu.memory_space<vmem>>, vector<2x1xf32>
      tpu.vector_store %arg5[%c0_17, %c0_18], %37 {strides = array<i32>} : memref<2x1xf32, #tpu.memory_space<vmem>>, vector<2x1xf32>,
    } else {
    }
    %c0 = arith.constant 0 : index
    %c0_1 = arith.constant 0 : index
    %3 = vector.load %arg2[%c0, %c0_1] : memref<2x32xf32, #tpu.memory_space<vmem>>, vector<2x32xf32>
    %c0_2 = arith.constant 0 : index
    %c0_3 = arith.constant 0 : index
    %4 = vector.load %arg3[%c0_2, %c0_3] : memref<2x32xf32, #tpu.memory_space<vmem>>, vector<2x32xf32>
    %5 = arith.mulf %3, %4 : vector<2x32xf32>
    %cst = arith.constant dense<0.000000e+00> : vector<2xf32>
    %6 = vector.multi_reduction <add>, %5, %cst [1] : vector<2x32xf32> to vector<2xf32>
    %7 = vector.shape_cast %6 : vector<2xf32> to vector<2x1xf32>
    %8 = arith.mulf %3, %3 : vector<2x32xf32>
    %cst_4 = arith.constant dense<0.000000e+00> : vector<2xf32>
    %9 = vector.multi_reduction <add>, %8, %cst_4 [1] : vector<2x32xf32> to vector<2xf32>
    %10 = vector.shape_cast %9 : vector<2xf32> to vector<2x1xf32>
    %11 = arith.mulf %4, %4 : vector<2x32xf32>
    %cst_5 = arith.constant dense<0.000000e+00> : vector<2xf32>
    %12 = vector.multi_reduction <add>, %11, %cst_5 [1] : vector<2x32xf32> to vector<2xf32>
    %13 = vector.shape_cast %12 : vector<2xf32> to vector<2x1xf32>
    %14 = arith.mulf %10, %13 : vector<2x1xf32>
    %cst_6 = arith.constant 9.99999996E-13 : f32
    %15 = vector.broadcast %cst_6 : f32 to vector<2x1xf32>
    %16 = arith.maximumf %14, %15 : vector<2x1xf32>
    %17 = math.rsqrt %16 : vector<2x1xf32>
    %18 = arith.mulf %7, %17 : vector<2x1xf32>
    %c1_i32 = arith.constant 1 : i32
    %19 = arith.muli %arg0, %c1_i32 : i32
    %20 = arith.addi %19, %arg1 : i32
    %c2_i32 = arith.constant 2 : i32
    %21 = arith.muli %20, %c2_i32 : i32
    %22 = tpu.iota {dimensions = array<i32: 0>} : vector<2x1xi32>
    %23 = vector.broadcast %21 : i32 to vector<2x1xi32>
    %24 = arith.addi %23, %22 : vector<2x1xi32>
    %c0_7 = arith.constant 0 : index
    %c0_8 = arith.constant 0 : index
    %25 = vector.load %arg5[%c0_7, %c0_8] : memref<2x1xf32, #tpu.memory_space<vmem>>, vector<2x1xf32>
    %c2_i32_9 = arith.constant 2 : i32
    %26 = vector.broadcast %c2_i32_9 : i32 to vector<2x1xi32>
    %27 = arith.cmpi slt, %24, %26 : vector<2x1xi32>
    %cst_10 = arith.constant 1.000000e+00 : f32
    %28 = vector.broadcast %cst_10 : f32 to vector<2x1xf32>
    %29 = arith.subf %28, %18 : vector<2x1xf32>
    %cst_11 = arith.constant 0.000000e+00 : f32
    %30 = vector.broadcast %cst_11 : f32 to vector<2x1xf32>
    %31 = arith.select %27, %29, %30 : vector<2x1xi1>, vector<2x1xf32>
    %32 = arith.addf %25, %31 : vector<2x1xf32>
    %c0_12 = arith.constant 0 : index
    %c0_13 = arith.constant 0 : index
    %33 = vector.load %arg5[%c0_12, %c0_13] : memref<2x1xf32, #tpu.memory_space<vmem>>, vector<2x1xf32>
    tpu.vector_store %arg5[%c0_12, %c0_13], %32 {strides = array<i32>} : memref<2x1xf32, #tpu.memory_space<vmem>>, vector<2x1xf32>,
    %c0_i32_14 = arith.constant 0 : i32
    %34 = arith.cmpi eq, %arg1, %c0_i32_14 : i32
    %35 = arith.extui %34 : i1 to i32
    %c0_i32_15 = arith.constant 0 : i32
    %36 = arith.cmpi ne, %35, %c0_i32_15 : i32
    scf.if %36 {
      %c0_16 = arith.constant 0 : index
      %c0_17 = arith.constant 0 : index
      %37 = vector.load %arg5[%c0_16, %c0_17] : memref<2x1xf32, #tpu.memory_space<vmem>>, vector<2x1xf32>
      %38 = vector.shape_cast %37 : vector<2x1xf32> to vector<1x2x1xf32>
      %cst_18 = arith.constant dense<0.000000e+00> : vector<1xf32>
      %39 = vector.multi_reduction <add>, %38, %cst_18 [1, 2] : vector<1x2x1xf32> to vector<1xf32>
      %40 = vector.shape_cast %39 : vector<1xf32> to vector<1x1x1xf32>
      %41 = vector.extract %40[0, 0, 0] : f32 from vector<1x1x1xf32>
      %42 = vector.broadcast %41 : f32 to vector<1x1xf32>
      %c0_19 = arith.constant 0 : index
      %c0_20 = arith.constant 0 : index
      %c0_21 = arith.constant 0 : index
      %43 = vector.load %arg4[%c0_19, %c0_20, %c0_21] : memref<1x1x1xf32, #tpu.memory_space<vmem>>, vector<1x1x1xf32>
      %44 = vector.shape_cast %43 : vector<1x1x1xf32> to vector<1x1xf32>
      %45 = vector.shape_cast %42 : vector<1x1xf32> to vector<1x1x1xf32>
      tpu.vector_store %arg4[%c0_19, %c0_20, %c0_21], %45 {strides = array<i32>} : memref<1x1x1xf32, #tpu.memory_space<vmem>>, vector<1x1x1xf32>,
    } else {
    }
    return
  }
  func.func @transform_0(%arg0: i32, %arg1: i32) -> (i32, i32) {
    %c1_i32 = arith.constant 1 : i32
    %0 = arith.muli %arg0, %c1_i32 : i32
    %1 = arith.addi %0, %arg1 : i32
    %c0_i32 = arith.constant 0 : i32
    %2 = arith.minsi %1, %c0_i32 : i32
    %c0_i32_0 = arith.constant 0 : i32
    %c0_i32_1 = arith.constant 0 : i32
    return %2, %c0_i32_0 : i32, i32
  }
  func.func @transform_1(%arg0: i32, %arg1: i32) -> (i32, i32) {
    %c1_i32 = arith.constant 1 : i32
    %0 = arith.muli %arg0, %c1_i32 : i32
    %1 = arith.addi %0, %arg1 : i32
    %c0_i32 = arith.constant 0 : i32
    %2 = arith.minsi %1, %c0_i32 : i32
    %c0_i32_0 = arith.constant 0 : i32
    %c0_i32_1 = arith.constant 0 : i32
    return %2, %c0_i32_0 : i32, i32
  }
  func.func @transform_2(%arg0: i32, %arg1: i32) -> (i32, i32, i32) {
    %c0_i32 = arith.constant 0 : i32
    %c0_i32_0 = arith.constant 0 : i32
    %c0_i32_1 = arith.constant 0 : i32
    return %arg0, %c0_i32, %c0_i32_0 : i32, i32, i32
  }
}

</mosaic_0001>

<bundles_post_ra>
// kernel: tpu_custom_call.1
= control target key start
LH: loop header
LB: loop body
LE: loop exit
PB: predicated region body
PF: predicated region fallthrough
CT: control target
= control target key end

     0   :  { %7 = vsyncpa [#allocation4], 0  ;;  %s232_s0 = inlined_call_operand.hbm [shape: f32[2,32], index: 0, kind: input, shape index: {}]   ;;  %s233_s1 = inlined_call_operand.hbm [shape: f32[2,32], index: 1, kind: input, shape index: {}]   ;;  %s234_s2 = inlined_call_operand.hbm [shape: f32[1,1,1], index: 2, kind: output, shape index: {}]  }
   0x1   :  { %8 = vsyncpa [#allocation7], 0 }
   0x2   :  { %9 = vsyncpa [#allocation5], 0  ;;  %s201_s9 = smov [#allocation3]   ;;  %s202_s11 = smov [#allocation6]  }
   0x3   :  { %s21_s10 = sshll.u32 %s201_s9, 4  ;;  %s36_s12 = sshll.u32 %s202_s11, 4  ;;  %s22_s10 = int_to_ptr.vmem [resolvable:$true] %s21_s10  ;;  %s37_s12 = int_to_ptr.vmem [resolvable:$true] %s36_s12 }
   0x4   :  { %s143_s13 = scalar_lea.vmem %s22_s10, 32  ;;  %p148_p1 = scmp.lt.s32.totalorder %s22_s10, %s22_s10 }
   0x5   :  { %p144_p0 = scmp.ne.s32.totalorder %s22_s10, %s143_s13  ;;  %p149_p2 = scmp.lt.s32.totalorder %s143_s13, %s143_s13 }
   0x7   :  { %p150_p3 = por %p149_p2, %p148_p1 }
   0x9   :  { %p151_p4 = pnand %p150_p3, %p144_p0 }
   0xb   :  { %154 = shalt.err (!%p151_p4)
}
   0xc   :  { %24 = dma.hbm_to_vmem [thread:$0]  %s232_s0, 32, %s22_s10, [#allocation4]  }
   0xd   :  { %s163_s16 = scalar_lea.vmem %s37_s12, 32  ;;  %p168_p6 = scmp.lt.s32.totalorder %s37_s12, %s37_s12 }
   0xe   :  { %p164_p5 = scmp.ne.s32.totalorder %s37_s12, %s163_s16  ;;  %p169_p7 = scmp.lt.s32.totalorder %s163_s16, %s163_s16 }
  0x10   :  { %p170_p8 = por %p169_p7, %p168_p6 }
  0x12   :  { %p171_p9 = pnand %p170_p8, %p164_p5 }
  0x14   :  { %174 = shalt.err (!%p171_p9)
}
  0x15   :  { %39 = dma.hbm_to_vmem [thread:$0]  %s233_s1, 32, %s37_s12, [#allocation7]  }
  0x16   :  { %195 = dma.done.wait [#allocation4], 32  }
  0x17   :  { %196 = vsyncadd [#allocation4], 4294967264 }
  0x18   :  { %197 = dma.done.wait [#allocation7], 32  }
  0x19   :  { %198 = vsyncadd [#allocation7], 4294967264  ;;  %v58_v0 = vld [vmem:[#allocation3] sm:$0x3]  ;;  %vm61_vm0 = vcmask 254976   ;;  %vm56_vm1 = vcmask 1024   ;;  %v79_v13 = vlaneseq }
  0x1a   :  { %v59_v1 = vld [vmem:[#allocation6] sm:$0x3]  ;;  %v65_v2 = vmul.f32 %v58_v0, %v58_v0  ;;  %v203_v8 = vmov 0.0   ;;  %s204_s0 = smov [#allocation8]   ;;  %vm105_vm3 = vcmask 0  }
  0x1b   :  { %v69_v3 = vmul.f32 %v59_v1, %v59_v1  ;;  %v60_v4 = vmul.f32 %v59_v1, %v58_v0  ;;  %57 = vst.msk [vmem:[#allocation2] sm:$0x3] %vm56_vm1, %v203_v8  ;;  %v80_v14 = vshrl.u32 %v79_v13, 7  ;;  %s113_s1 = sshll.u32 %s204_s0, 4  ;;  %s114_s1 = int_to_ptr.vmem [resolvable:$true] %s113_s1 }
  0x1c   :  { %v66_v5 = vsel %vm61_vm0, %v65_v2, 0.0  ;;  %s175_s20 = scalar_lea.vmem %s114_s1, 16  ;;  %s179_s21 = scalar_lea.vmem %s114_s1, 32 }
  0x1d   :  { %v62_v6 = vsel %vm61_vm0, %v60_v4, 0.0  ;;  %67 = vadd.xlane.f32.xlu0 %v66_v5  ;;  %v70_v7 = vsel %vm61_vm0, %v69_v3, 0.0  ;;  %vm84_vm2 = vcmp.lt.s32.totalorder %v80_v14, 2  ;;  %p176_p10 = scmp.ne.s32.totalorder %s114_s1, %s175_s20  ;;  %p180_p11 = scmp.lt.s32.totalorder %s114_s1, %s114_s1 }
  0x1e   :  { %63 = vadd.xlane.f32.xlu1 %v62_v6  ;;  %p181_p12 = scmp.lt.s32.totalorder %s179_s21, %s175_s20 }
  0x20   :  { %p182_p13 = por %p181_p12, %p180_p11 }
  0x21   :  { %71 = vadd.xlane.f32.xlu0 %v70_v7 }
  0x22   :  { %v83_v19 = vld [vmem:[#allocation2] sm:$0x3]  ;;  %p183_p0 = pnand %p182_p13, %p176_p10 }
  0xa6   :  { %v68_v9 = vpop.xlane.xlu0 %67 }
  0xa7   :  { %v64_v15 = vpop.xlane.xlu1 %63 }
  0xaa   :  { %v72_v10 = vpop.xlane.xlu0 %71 }
  0xab   :  { %v73_v11 = vmul.f32 %v72_v10, %v68_v9 }
  0xad   :  { %v74_v12 = vmax.f32 %v73_v11, 1e-12 }
  0xaf   :  { %133 = vrsqrt.f32 %v74_v12 }
  0xbc   :  { %v134_v16 = vpop.eup %133 }
  0xbd   :  { %v76_v17 = vmul.f32 %v134_v16, %v64_v15 }
  0xbf   :  { %v85_v18 = vsub.f32 1.0, %v76_v17 }
  0xc1   :  { %v86_v20 = vsel %vm84_vm2, %v85_v18, 0.0 }
  0xc2   :  { %v87_v21 = vadd.f32 %v86_v20, %v83_v19 }
  0xc4   :  { %89 = vst.msk [vmem:[#allocation2] sm:$0x3] %vm56_vm1, %v87_v21 }
  0xcb   :  { %v93_v22 = vld [vmem:[#allocation2] sm:$0x3] }
  0xcc   :  { %v94_v23 = vsel %vm56_vm1, %v93_v22, 0.0 }
  0xcd   :  { %95 = vadd.xlane.f32.xlu1 %v94_v23 }
 0x156   :  { %v96_v24 = vpop.xlane.xlu1 %95 }
 0x157   :  { %v97_v25 = vrot.slane %v96_v24, 4 }
 0x159   :  { %v98_v26 = vadd.f32 %v97_v25, %v96_v24 }
 0x15b   :  { %v99_v27 = vrot.slane %v98_v26, 2 }
 0x15d   :  { %v100_v28 = vadd.f32 %v99_v27, %v98_v26 }
 0x15f   :  { %v101_v29 = vrot.slane %v100_v28, 1 }
 0x161   :  { %v102_v30 = vadd.f32 %v101_v29, %v100_v28 }
 0x163   :  { %127 = vpush %v102_v30 }
 0x194   :  { %s128_s19 = spop %127 }
 0x195   :  { %v104_v31 = vstv %s128_s19 }
 0x196   :  { %106 = vst.msk [vmem:[#allocation8] sm:$0x1] %vm105_vm3, %v104_v31 }
 0x197   :  { %186 = shalt.err (!%p183_p0)
}
 0x198   :  { %116 = dma.vmem_to_hbm [thread:$0]  %s114_s1, 16, %s234_s2, [#allocation5]  }
 0x199   :  { %199 = dma.done.wait [#allocation5], 16  }
 0x19a   :  { %200 = vsyncadd [#allocation5], 4294967280 }
 0x19b   :  { %120 = vsyncpa [#allocation4], 1 }
 0x19c   :  { %121 = vsyncpa [#allocation7], 1 }
 0x19d   :  { %122 = vsyncpa [#allocation5], 1 }

</bundles_post_ra>
